<compile_context>
chip_gen: v7x
topology: tpu7x:2x2x1
jax: 0.10.0
libtpu: 0.0.40
codegen_flags: <defaults>
</compile_context>

<pallas_src>
import numpy as np
import jax
import jax.numpy as jnp
from jax.experimental import pallas as pl
from jax.experimental.pallas import tpu as pltpu


def _round_up(x, m):
    return ((x + m - 1) // m) * m


def bern_layer(weights, biases, x_stacked, *, max_tc=2048,
               vmem_budget_bytes=24 * 1024 * 1024):
    """One fully connected Bernstein-enclosure layer (single fused Pallas kernel).

    x_stacked : (2*n_in, C) float32, rows are [over ; under], coefficients on lanes.
    Returns   : (under_out (n_out, C), over_out (n_out, C),
                 lo (n_out,) = min(under_out, -1), hi (n_out,) = max(over_out, -1))
    """
    weights = jnp.asarray(weights, jnp.float32)
    biases = jnp.asarray(biases, jnp.float32)
    x_stacked = jnp.asarray(x_stacked, jnp.float32)

    n_out, n_in = weights.shape
    two_n_in, C = x_stacked.shape
    assert two_n_in == 2 * n_in, "x_stacked must stack [over; under] on axis 0"

    # Pad the node (sublane) axis to a multiple of 8 so in-kernel row slices align.
    n_out_p = _round_up(n_out, 8)
    w = jnp.zeros((n_out_p, n_in), jnp.float32).at[:n_out].set(weights)
    b = jnp.zeros((n_out_p,), jnp.float32).at[:n_out].set(biases)

    # Stacked weight [[W+, W-], [W-, W+]] (W+ = relu(W), W- = -relu(-W)): one MXU dot
    # produces [over_out ; under_out].  Built once per layer with tiny XLA ops.
    wp = jnp.maximum(w, 0.0)
    wn = jnp.minimum(w, 0.0)
    wc = jnp.concatenate(
        [jnp.concatenate([wp, wn], axis=1),
         jnp.concatenate([wn, wp], axis=1)], axis=0)        # (2*n_out_p, 2*n_in)
    bc = jnp.concatenate([b, b]).reshape(2 * n_out_p, 1)    # (2*n_out_p, 1)

    # Lane tile: largest multiple of 128 that fits the VMEM budget.
    def working_set_bytes(t):
        return 4 * (2 * (2 * n_in) * t                 # x tile, double buffered
                    + 2 * (2 * n_out_p) * t            # y tile, double buffered
                    + 2 * (2 * n_out_p) * (2 * n_in)   # stacked weight
                    + 8 * n_out_p)                     # bias + partial min/max

    tc = min(_round_up(C, 128), _round_up(max_tc, 128))
    while tc > 128 and working_set_bytes(tc) > vmem_budget_bytes:
        tc -= 128
    Cp = _round_up(C, tc)
    num_tiles = Cp // tc
    needs_mask = Cp != C
    if needs_mask:
        x_stacked = jnp.pad(x_stacked, ((0, 0), (0, Cp - C)))

    def kernel(wc_ref, bc_ref, x_ref, y_ref, pmin_ref, pmax_ref):
        # Single stacked matmul + one bias broadcast-add.
        y = jnp.dot(wc_ref[...], x_ref[...],
                    preferred_element_type=jnp.float32) + bc_ref[...]
        y_ref[...] = y.astype(y_ref.dtype)

        over_part = y[:n_out_p, :]        # combined over coefficients
        under_part = y[n_out_p:, :]       # combined under coefficients
        if needs_mask:
            lane = jax.lax.broadcasted_iota(jnp.int32, (n_out_p, tc), 1)
            valid = (pl.program_id(0) * tc + lane) < C
            over_part = jnp.where(valid, over_part, -jnp.inf)
            under_part = jnp.where(valid, under_part, jnp.inf)

        # Per-tile partial bounds (reduced in the wrapper) -> the lane-tile grid
        # axis carries no cross-iteration state and stays "parallel".
        pmax_ref[0] = over_part.max(axis=-1, keepdims=True)
        pmin_ref[0] = under_part.min(axis=-1, keepdims=True)

    vmem_limit = int(min(48 * 1024 * 1024,
                         max(16 * 1024 * 1024, 2 * working_set_bytes(tc))))

    y, pmin, pmax = pl.pallas_call(
        kernel,
        out_shape=(
            jax.ShapeDtypeStruct((2 * n_out_p, Cp), jnp.float32),        # [over;under]
            jax.ShapeDtypeStruct((num_tiles, n_out_p, 1), jnp.float32),  # partial min
            jax.ShapeDtypeStruct((num_tiles, n_out_p, 1), jnp.float32),  # partial max
        ),
        grid_spec=pltpu.PrefetchScalarGridSpec(
            num_scalar_prefetch=0,
            grid=(num_tiles,),
            in_specs=[
                pl.BlockSpec((2 * n_out_p, 2 * n_in), lambda c: (0, 0)),  # Wc
                pl.BlockSpec((2 * n_out_p, 1), lambda c: (0, 0)),         # bias
                pl.BlockSpec((2 * n_in, tc), lambda c: (0, c)),           # X tile
            ],
            out_specs=[
                pl.BlockSpec((2 * n_out_p, tc), lambda c: (0, c)),        # Y tile
                pl.BlockSpec((1, n_out_p, 1), lambda c: (c, 0, 0)),       # partial min
                pl.BlockSpec((1, n_out_p, 1), lambda c: (c, 0, 0)),       # partial max
            ],
        ),
        compiler_params=pltpu.CompilerParams(
            dimension_semantics=("parallel",),
            vmem_limit_bytes=vmem_limit,
        ),
    )(wc, bc, x_stacked)

    over_out = y[:n_out, :C]
    under_out = y[n_out_p:n_out_p + n_out, :C]
    if num_tiles == 1:
        lo = pmin[0, :n_out, 0]
        hi = pmax[0, :n_out, 0]
    else:
        lo = pmin[:, :n_out, 0].min(axis=0)
        hi = pmax[:, :n_out, 0].max(axis=0)
    return under_out, over_out, lo, hi


class NetworkModulePallas:
    """JAX/Pallas port of Bern_NN.NetworkModule (final-layer / degree-preserving path)."""

    def __init__(self, dims, intervals, layer_weights, layer_biases, sizes,
                 order, linear_iter_numb):
        self.dims = dims
        self.intervals = intervals
        self.layer_weights = layer_weights
        self.layer_biases = layer_biases
        self.sizes = sizes
        self.order = order
        self.linear_iter_numb = linear_iter_numb
        self.num_layers = len(sizes) - 1

    def forward(self, inputs):
        # `inputs`: stacked Bernstein coefficient tensors, shape (sizes[0], *coeff_shape)
        coeff_shape = tuple(inputs.shape[1:])
        C = int(np.prod(coeff_shape))
        flat = jnp.asarray(inputs, jnp.float32).reshape(inputs.shape[0], C)
        x = jnp.concatenate([flat, flat], axis=0)   # [over ; under], over == under == inputs

        layer_stats = []   # device arrays; single host transfer after the loop
        under = over = flat
        for i in range(1, self.num_layers + 1):
            under, over, lo, hi = bern_layer(
                self.layer_weights[i - 1], self.layer_biases[i - 1], x)
            des = jnp.where(lo >= 0.0, 0, jnp.where(hi <= 0.0, 1, 2)).astype(jnp.int32)
            layer_stats.append((lo, hi, des))

            if i != self.num_layers:
                # TODO(synk): hidden-layer ReLU polynomial composition needs
                # bern_multiply / relu_monom_coeffs (undefined in the reference source).
                raise NotImplementedError(
                    "hidden-layer ReLU polynomial composition not available")

            if self.linear_iter_numb != 0 and i % self.linear_iter_numb == 0:
                # TODO(synk): lstsq-based affine Bernstein relaxation not lowered to Pallas.
                pass

        # layer_desc() bookkeeping: one host transfer for all layers.
        stats_host = jax.device_get(layer_stats)
        network_nodes_des = []
        for li, (lo_h, hi_h, des_h) in enumerate(stats_host, start=1):
            nodes = [{'node_indx': n,
                      'min_max': [float(lo_h[n]), float(hi_h[n])],
                      'des': int(des_h[n])}
                     for n in range(self.sizes[li])]
            network_nodes_des.append({'layer_indx': li, 'nodes': nodes})

        out_shape = (self.sizes[-1],) + coeff_shape
        return (under.reshape(out_shape), over.reshape(out_shape),
                network_nodes_des)


def _ref_layer_jnp(w, b, under, over):
    """Pure-JAX reference of the layer hot path, for correctness checks."""
    w = jnp.asarray(w, jnp.float32)
    b = jnp.asarray(b, jnp.float32)
    wp = jnp.maximum(w, 0.0)
    wn = jnp.minimum(w, 0.0)
    over_out = wp @ over + wn @ under + b[:, None]
    under_out = wn @ over + wp @ under + b[:, None]
    return under_out, over_out


if __name__ == "__main__":
    key = jax.random.PRNGKey(0)
    (k_in, k_w, k_b, k_o2, k_u2, k_w2, k_b2,
     k_o3, k_u3, k_w3, k_b3) = jax.random.split(key, 11)

    # --- Test 1: NetworkModulePallas forward (final-layer path), C = 256 ---
    dims = 2
    deg = 15                              # per-dim polynomial degree
    coeff_shape = (deg + 1, deg + 1)      # (16, 16) -> C = 256
    sizes = [4, 8]                        # 4 network inputs, one layer of 8 nodes
    order = 2
    linear_iter_numb = 0
    intervals = jnp.stack(
        [jnp.full((dims,), -1.0), jnp.full((dims,), 1.0)], axis=1)

    inputs = jax.random.normal(k_in, (sizes[0],) + coeff_shape, dtype=jnp.float32)
    layer_weights = [jax.random.normal(k_w, (sizes[1], sizes[0]), dtype=jnp.float32)]
    layer_biases = [0.1 * jax.random.normal(k_b, (sizes[1],), dtype=jnp.float32)]

    net = NetworkModulePallas(dims, intervals, layer_weights, layer_biases,
                              sizes, order, linear_iter_numb)
    under_out, over_out, nodes_des = net.forward(inputs)
    under_out, over_out = jax.block_until_ready((under_out, over_out))

    C = int(np.prod(coeff_shape))
    flat_in = inputs.reshape(sizes[0], C)
    ref_under, ref_over = _ref_layer_jnp(layer_weights[0], layer_biases[0],
                                         flat_in, flat_in)
    np.testing.assert_allclose(np.asarray(under_out).reshape(sizes[1], C),
                               np.asarray(ref_under), rtol=1e-5, atol=1e-5)
    np.testing.assert_allclose(np.asarray(over_out).reshape(sizes[1], C),
                               np.asarray(ref_over), rtol=1e-5, atol=1e-5)
    assert len(nodes_des) == 1 and len(nodes_des[0]['nodes']) == sizes[1]
    lo_ref = np.asarray(ref_under).min(axis=-1)
    hi_ref = np.asarray(ref_over).max(axis=-1)
    for n, node in enumerate(nodes_des[0]['nodes']):
        assert abs(node['min_max'][0] - lo_ref[n]) < 1e-4
        assert abs(node['min_max'][1] - hi_ref[n]) < 1e-4
        des_ref = 0 if lo_ref[n] >= 0 else (1 if hi_ref[n] <= 0 else 2)
        assert node['des'] == des_ref

    # --- Test 2: padded/masked lane path (C not a multiple of 128), over != under ---
    n_in2, n_out2, C2 = 3, 5, 100
    over2 = jax.random.normal(k_o2, (n_in2, C2), dtype=jnp.float32)
    under2 = over2 - jnp.abs(jax.random.normal(k_u2, (n_in2, C2), dtype=jnp.float32))
    w2 = jax.random.normal(k_w2, (n_out2, n_in2), dtype=jnp.float32)
    b2 = 0.1 * jax.random.normal(k_b2, (n_out2,), dtype=jnp.float32)
    u2, o2, lo2, hi2 = bern_layer(w2, b2, jnp.concatenate([over2, under2], axis=0))
    u2, o2, lo2, hi2 = jax.block_until_ready((u2, o2, lo2, hi2))
    ru2, ro2 = _ref_layer_jnp(w2, b2, under2, over2)
    np.testing.assert_allclose(np.asarray(u2), np.asarray(ru2), rtol=1e-5, atol=1e-5)
    np.testing.assert_allclose(np.asarray(o2), np.asarray(ro2), rtol=1e-5, atol=1e-5)
    np.testing.assert_allclose(np.asarray(lo2), np.asarray(ru2).min(axis=-1),
                               rtol=1e-5, atol=1e-5)
    np.testing.assert_allclose(np.asarray(hi2), np.asarray(ro2).max(axis=-1),
                               rtol=1e-5, atol=1e-5)

    # --- Test 3: multi-tile "parallel" lane grid with partial min/max reduction ---
    n_in3, n_out3, C3 = 4, 8, 512
    over3 = jax.random.normal(k_o3, (n_in3, C3), dtype=jnp.float32)
    under3 = over3 - jnp.abs(jax.random.normal(k_u3, (n_in3, C3), dtype=jnp.float32))
    w3 = jax.random.normal(k_w3, (n_out3, n_in3), dtype=jnp.float32)
    b3 = 0.1 * jax.random.normal(k_b3, (n_out3,), dtype=jnp.float32)
    u3, o3, lo3, hi3 = bern_layer(w3, b3, jnp.concatenate([over3, under3], axis=0),
                                  max_tc=128)  # force 4 lane tiles
    u3, o3, lo3, hi3 = jax.block_until_ready((u3, o3, lo3, hi3))
    ru3, ro3 = _ref_layer_jnp(w3, b3, under3, over3)
    np.testing.assert_allclose(np.asarray(u3), np.asarray(ru3), rtol=1e-5, atol=1e-5)
    np.testing.assert_allclose(np.asarray(o3), np.asarray(ro3), rtol=1e-5, atol=1e-5)
    np.testing.assert_allclose(np.asarray(lo3), np.asarray(ru3).min(axis=-1),
                               rtol=1e-5, atol=1e-5)
    np.testing.assert_allclose(np.asarray(hi3), np.asarray(ro3).max(axis=-1),
                               rtol=1e-5, atol=1e-5)

    print("KERNEL_OK")
</pallas_src>

<mosaic_0001>
module attributes {stable_mosaic.version = 11 : i64} {
  func.func @kernel(%arg0: i32, %arg1: memref<16x8xf32, #tpu.memory_space<vmem>>, %arg2: memref<16x1xf32, #tpu.memory_space<vmem>>, %arg3: memref<8x256xf32, #tpu.memory_space<vmem>>, %arg4: memref<16x256xf32, #tpu.memory_space<vmem>>, %arg5: memref<1x8x1xf32, #tpu.memory_space<vmem>>, %arg6: memref<1x8x1xf32, #tpu.memory_space<vmem>>) attributes {dimension_semantics = [#tpu.dimension_semantics<parallel>], iteration_bounds = array<i64: 1>, scalar_prefetch = 0 : i64, scratch_operands = 0 : i64, tpu.core_type = #tpu.core_type<tc>, window_params = [{pipeline_mode = #tpu.pipeline_mode<synchronous>, transform_indices = @transform_0, window_bounds = array<i64: 16, 8>}, {pipeline_mode = #tpu.pipeline_mode<synchronous>, transform_indices = @transform_1, window_bounds = array<i64: 16, 1>}, {transform_indices = @transform_2, window_bounds = array<i64: 8, 256>}, {transform_indices = @transform_3, window_bounds = array<i64: 16, 256>}, {transform_indices = @transform_4, window_bounds = array<i64: 1, 8, 1>}, {transform_indices = @transform_5, window_bounds = array<i64: 1, 8, 1>}]} {
    %c0 = arith.constant 0 : index
    %c0_0 = arith.constant 0 : index
    %0 = vector.load %arg1[%c0, %c0_0] : memref<16x8xf32, #tpu.memory_space<vmem>>, vector<16x8xf32>
    %c0_1 = arith.constant 0 : index
    %c0_2 = arith.constant 0 : index
    %1 = vector.load %arg3[%c0_1, %c0_2] : memref<8x256xf32, #tpu.memory_space<vmem>>, vector<8x256xf32>
    %cst = arith.constant dense<0.000000e+00> : vector<16x256xf32>
    %2 = tpu.matmul %0, %1, %cst {dimension_numbers = #tpu.dot_dimension_numbers<[1], [0], [0], [1], [0, 0, 1, 1], [], []>} : vector<16x8xf32>, vector<8x256xf32>, vector<16x256xf32> -> vector<16x256xf32>
    %c0_3 = arith.constant 0 : index
    %c0_4 = arith.constant 0 : index
    %3 = vector.load %arg2[%c0_3, %c0_4] : memref<16x1xf32, #tpu.memory_space<vmem>>, vector<16x1xf32>
    %4 = vector.broadcast %3 : vector<16x1xf32> to vector<16x256xf32>
    %5 = arith.addf %2, %4 : vector<16x256xf32>
    %c0_5 = arith.constant 0 : index
    %c0_6 = arith.constant 0 : index
    %6 = vector.load %arg4[%c0_5, %c0_6] : memref<16x256xf32, #tpu.memory_space<vmem>>, vector<16x256xf32>
    tpu.vector_store %arg4[%c0_5, %c0_6], %5 {strides = array<i32>} : memref<16x256xf32, #tpu.memory_space<vmem>>, vector<16x256xf32>,
    %7 = vector.extract_strided_slice %5 {offsets = [0, 0], sizes = [8, 256], strides = [1, 1]} : vector<16x256xf32> to vector<8x256xf32>
    %8 = vector.extract_strided_slice %5 {offsets = [8, 0], sizes = [8, 256], strides = [1, 1]} : vector<16x256xf32> to vector<8x256xf32>
    %cst_7 = arith.constant dense<0xFF800000> : vector<8xf32>
    %9 = vector.multi_reduction <maximumf>, %7, %cst_7 [1] : vector<8x256xf32> to vector<8xf32>
    %10 = vector.shape_cast %9 : vector<8xf32> to vector<8x1xf32>
    %c0_8 = arith.constant 0 : index
    %c0_9 = arith.constant 0 : index
    %c0_10 = arith.constant 0 : index
    %11 = vector.load %arg6[%c0_8, %c0_9, %c0_10] : memref<1x8x1xf32, #tpu.memory_space<vmem>>, vector<1x8x1xf32>
    %12 = vector.shape_cast %11 : vector<1x8x1xf32> to vector<8x1xf32>
    %13 = vector.shape_cast %10 : vector<8x1xf32> to vector<1x8x1xf32>
    tpu.vector_store %arg6[%c0_8, %c0_9, %c0_10], %13 {strides = array<i32>} : memref<1x8x1xf32, #tpu.memory_space<vmem>>, vector<1x8x1xf32>,
    %cst_11 = arith.constant dense<0x7F800000> : vector<8xf32>
    %14 = vector.multi_reduction <minimumf>, %8, %cst_11 [1] : vector<8x256xf32> to vector<8xf32>
    %15 = vector.shape_cast %14 : vector<8xf32> to vector<8x1xf32>
    %c0_12 = arith.constant 0 : index
    %c0_13 = arith.constant 0 : index
    %c0_14 = arith.constant 0 : index
    %16 = vector.load %arg5[%c0_12, %c0_13, %c0_14] : memref<1x8x1xf32, #tpu.memory_space<vmem>>, vector<1x8x1xf32>
    %17 = vector.shape_cast %16 : vector<1x8x1xf32> to vector<8x1xf32>
    %18 = vector.shape_cast %15 : vector<8x1xf32> to vector<1x8x1xf32>
    tpu.vector_store %arg5[%c0_12, %c0_13, %c0_14], %18 {strides = array<i32>} : memref<1x8x1xf32, #tpu.memory_space<vmem>>, vector<1x8x1xf32>,
    return
  }
  func.func @transform_0(%arg0: i32) -> (i32, i32) {
    %c0_i32 = arith.constant 0 : i32
    %c0_i32_0 = arith.constant 0 : i32
    %c0_i32_1 = arith.constant 0 : i32
    return %c0_i32, %c0_i32_0 : i32, i32
  }
  func.func @transform_1(%arg0: i32) -> (i32, i32) {
    %c0_i32 = arith.constant 0 : i32
    %c0_i32_0 = arith.constant 0 : i32
    %c0_i32_1 = arith.constant 0 : i32
    return %c0_i32, %c0_i32_0 : i32, i32
  }
  func.func @transform_2(%arg0: i32) -> (i32, i32) {
    %c0_i32 = arith.constant 0 : i32
    %c0_i32_0 = arith.constant 0 : i32
    return %c0_i32, %arg0 : i32, i32
  }
  func.func @transform_3(%arg0: i32) -> (i32, i32) {
    %c0_i32 = arith.constant 0 : i32
    %c0_i32_0 = arith.constant 0 : i32
    return %c0_i32, %arg0 : i32, i32
  }
  func.func @transform_4(%arg0: i32) -> (i32, i32, i32) {
    %c0_i32 = arith.constant 0 : i32
    %c0_i32_0 = arith.constant 0 : i32
    %c0_i32_1 = arith.constant 0 : i32
    return %arg0, %c0_i32, %c0_i32_0 : i32, i32, i32
  }
  func.func @transform_5(%arg0: i32) -> (i32, i32, i32) {
    %c0_i32 = arith.constant 0 : i32
    %c0_i32_0 = arith.constant 0 : i32
    %c0_i32_1 = arith.constant 0 : i32
    return %arg0, %c0_i32, %c0_i32_0 : i32, i32, i32
  }
}

</mosaic_0001>

<bundles_post_ra>
// kernel: tpu_custom_call.1
= control target key start
LH: loop header
LB: loop body
LE: loop exit
PB: predicated region body
PF: predicated region fallthrough
CT: control target
= control target key end

     0   :  { %vm34_vm0 = vcmask 64512   ;;  %s260_s0 = inlined_call_operand.vmem [shape: f32[16,8], index: 0, kind: input, shape index: {}]   ;;  %s261_s1 = inlined_call_operand.vmem [shape: f32[16,1], index: 1, kind: input, shape index: {}]   ;;  %s262_s2 = inlined_call_operand.vmem [shape: f32[8,256], index: 2, kind: input, shape index: {}]   ;;  %s263_s3 = inlined_call_operand.hbm [shape: f32[16,256], index: 3, kind: output, shape index: {0}]   ;;  %s264_s4 = inlined_call_operand.vmem [shape: f32[1,8,1], index: 4, kind: output, shape index: {1}]   ;;  %s265_s5 = inlined_call_operand.vmem [shape: f32[1,8,1], index: 5, kind: output, shape index: {2}]  }
   0x1   :  { %v21_v0 = vld [vmem:[%s262_s2 + $0x8] sm:$0xff]  ;;  %v20_v1 = vld [vmem:[%s262_s2] sm:$0xff] }
   0x2   :  { %41 = vmatprep.subr.mxu0 %v21_v0  ;;  %157 = vmatprep.subr.mxu1 %v21_v0  ;;  %v18_v2 = vld [vmem:[%s260_s0] sm:$0xff]  ;;  %v19_v3 = vld [vmem:[%s260_s0 + $0x8] sm:$0xff] }
   0x3   :  { %42 = vmatpush1.msra.mxu0 %v20_v1  ;;  %158 = vmatpush1.msra.mxu1 %v20_v1 }
   0x4   :  { %11 = vsyncpa [#allocation3], 0  ;;  %v189_v4 = vmov 0.0   ;;  %v22_v5 = vld [vmem:[%s261_s1] sm:$0xff]  ;;  %v190_v6 = vmov 0   ;;  %v23_v7 = vld [vmem:[%s261_s1 + $0x8] sm:$0xff] }
   0x5   :  { %105 = vmatprep.mubr.f32.mxu0 %v189_v4  ;;  %111 = vmatprep.mubr.f32.mxu1 %v189_v4  ;;  %s191_s0 = smov [#allocation2]  }
   0x6   :  { %155 = vmatmul.mubr.msk.f32.vlgmr.msra.gmra.mrb[0].mxu0 %vm34_vm0, %v18_v2  ;;  %156 = vmatmul.mubr.msk.f32.vlgmr.msra.gmra.mrb[0].mxu1 %vm34_vm0, %v19_v3  ;;  %s136_s1 = sshll.u32 %s191_s0, 4  ;;  %s137_s1 = int_to_ptr.vmem [resolvable:$true] %s136_s1 }
   0x7   :  { %164 = vset.pattern.permute.xlu0 %v190_v6  ;;  %s165_s29 = scalar_lea.vmem %s137_s1, 512  ;;  %p170_p1 = scmp.lt.s32.totalorder %s137_s1, %s137_s1 }
   0x8   :  { %26 = vperm.xlu0 %164, %v22_v5   ;;  %p166_p0 = scmp.ne.s32.totalorder %s137_s1, %s165_s29  ;;  %p171_p2 = scmp.lt.s32.totalorder %s165_s29, %s165_s29 }
   0xa   :  { %p172_p3 = por %p171_p2, %p170_p1 }
   0xc   :  { %31 = vperm.xlu0 %164, %v23_v7   ;;  %p173_p4 = pnand %p172_p3, %p166_p0 }
  0x87   :  { %v27_v8 = vpop.permute.xlu0 %26 }
  0x8b   :  { %v32_v9 = vpop.permute.xlu0 %31 }
  0xd9   :  { %v107_v10 = vpop.f32.mrb[0].mxu0  ;;  %v113_v11 = vpop.f32.mrb[0].mxu1 }
  0xda   :  { %v108_v12 = vadd.f32 %v107_v10, %v27_v8  ;;  %v114_v13 = vadd.f32 %v113_v11, %v32_v9  ;;  %v109_v14 = vpop.f32.mrb[1].mxu0  ;;  %v115_v15 = vpop.f32.mrb[1].mxu1 }
  0xdb   :  { %v110_v16 = vadd.f32 %v109_v14, %v27_v8  ;;  %v116_v17 = vadd.f32 %v115_v15, %v32_v9 }
  0xdc   :  { %118 = vst [vmem:[#allocation2] sm:$0xff] %v108_v12  ;;  %120 = vst [vmem:[#allocation2 + $0x10] sm:$0xff] %v114_v13 }
  0xdd   :  { %119 = vst [vmem:[#allocation2 + $0x8] sm:$0xff] %v110_v16  ;;  %121 = vst [vmem:[#allocation2 + $0x18] sm:$0xff] %v116_v17  ;;  %v122_v18 = vmax.f32 %v108_v12, %v110_v16  ;;  %v127_v19 = vmin.f32 %v114_v13, %v116_v17 }
  0xdf   :  { %123 = vmax.xlane.f32.xlu1 %v122_v18 }
  0xe3   :  { %128 = vmin.xlane.f32.xlu1 %v127_v19 }
  0xe4   :  { %176 = shalt.err (!%p173_p4)
}
  0xe5   :  { %s177_s7 = scalar_lea.hbm %s263_s3, 512 }
  0xe6   :  { %p178_p5 = scmp.ne.s32.totalorder %s263_s3, %s177_s7  ;;  %p181_p6 = scmp.lt.u32.totalorder %s177_s7, %s263_s3 }
  0xe8   :  { %p183_p7 = pnand %p181_p6, %p178_p5 }
  0xea   :  { %186 = shalt.err (!%p183_p7)
}
  0xeb   :  { %s192_s12 = smov 256   ;;  %s193_s13 = smov 16   ;;  %vm125_vm1 = vcmask 7168  }
  0xec   :  { %142 = dma.vmem_to_hbm [thread:$0]  %s137_s1, 512, %s263_s3, [#allocation3], %s192_s12, %s192_s12, %s193_s13  }
 0x16c   :  { %v124_v20 = vpop.xlane.xlu1 %123 }
 0x16d   :  { %126 = vst.msk [vmem:[%s265_s5] sm:$0xff] %vm125_vm1, %v124_v20 }
 0x170   :  { %v129_v21 = vpop.xlane.xlu1 %128 }
 0x171   :  { %130 = vst.msk [vmem:[%s264_s4] sm:$0xff] %vm125_vm1, %v129_v21 }
 0x172   :  { %187 = dma.done.wait [#allocation3], 512  }
 0x173   :  { %188 = vsyncadd [#allocation3], 4294966784 }
 0x174   :  { %154 = vsyncpa [#allocation3], 1 }

</bundles_post_ra>
